<compile_context>
chip_gen: v7x
topology: tpu7x:2x2x1
jax: 0.10.0
libtpu: 0.0.40
codegen_flags: <defaults>
</compile_context>

<pallas_src>
import jax
import jax.numpy as jnp
from jax.experimental import pallas as pl
from jax.experimental.pallas import tpu as pltpu


# ----------------------------- Pallas kernel -------------------------------- #
def pagfm_kernel(x_ref, y_ref, ah_ref, awt_ref, wx_ref, bx_ref, wy_ref, by_ref,
                 out_ref, yh_ref, yup_ref):
    # x_ref  : (1, C, Ht*W)   VMEM  high-res tile, spatial flattened h-major
    # y_ref  : (1, C, Hy, Wy) VMEM  full low-res y for this batch element
    # ah_ref : (Ht, Hy)       VMEM  rows of the H-direction interp matrix
    # awt_ref: (Wy, W)        VMEM  transposed W-direction interp matrix
    # wx_ref : (MID, C)       VMEM  folded Conv1x1+BN weights for f_x
    # bx_ref : (MID, 1)       VMEM  folded bias for f_x
    # wy_ref : (MID, C)       VMEM  folded Conv1x1+BN weights for f_y
    # by_ref : (MID, 1)       VMEM  folded bias for f_y
    # out_ref: (1, C, Ht*W)   VMEM
    # yh_ref : (C, Ht, Wy)    VMEM scratch: y after the H interpolation pass
    # yup_ref: (C, Ht*W)      VMEM scratch: fully upsampled y, flat layout
    C = x_ref.shape[1]
    Ht, Hy = ah_ref.shape
    Wy, W = awt_ref.shape

    x2 = x_ref[0]                         # (C, Ht*W)
    y3 = y_ref[0]                         # (C, Hy, Wy)
    awt = awt_ref[...]                    # (Wy, W)

    # ---- bilinear upsample of y (both passes on the MXU) ----
    # H direction: one channel-batched matmul (C, Ht, Hy) @ (C, Hy, Wy).
    ah_b = jnp.broadcast_to(ah_ref[...][None, :, :], (C, Ht, Hy))
    yh_ref[...] = jnp.einsum('chk,ckv->chv', ah_b, y3,
                             preferred_element_type=jnp.float32)
    # W direction, fused with flattening into the lane-dense (C, Ht*W) layout.
    # Ht is a small fixed tile parameter; each step is a dense (C,Wy)@(Wy,W)
    # matmul over all channels.
    for h in range(Ht):
        yup_ref[:, h * W:(h + 1) * W] = jnp.dot(
            yh_ref[:, h, :], awt, preferred_element_type=jnp.float32)
    y_up = yup_ref[...]                   # (C, Ht*W)

    # ---- 1x1 convs (+ folded BN) as dense MXU matmuls, bias added once ----
    # f_y is applied after the resize (interp rows sum to 1, so it commutes).
    xk = jnp.dot(wx_ref[...], x2, preferred_element_type=jnp.float32) + bx_ref[...]
    yq = jnp.dot(wy_ref[...], y_up, preferred_element_type=jnp.float32) + by_ref[...]

    # ---- similarity map and blend (single lane-dense store) ----
    sim = jax.nn.sigmoid(jnp.sum(xk * yq, axis=0, keepdims=True))   # (1, Ht*W)
    out_ref[0] = ((1.0 - sim) * x2 + sim * y_up).astype(out_ref.dtype)


# --------------------------- host-side helpers ------------------------------ #
def bilinear_matrix(out_size, in_size, dtype=jnp.float32):
    """Interpolation matrix M (out, in) s.t. out_vec = M @ in_vec, matching
    F.interpolate(mode='bilinear', align_corners=False) along one axis."""
    i = jnp.arange(out_size, dtype=jnp.float32)
    src = (i + 0.5) * (in_size / out_size) - 0.5
    src = jnp.maximum(src, 0.0)
    i0 = jnp.minimum(jnp.floor(src).astype(jnp.int32), in_size - 1)
    i1 = jnp.minimum(i0 + 1, in_size - 1)
    frac = src - i0.astype(jnp.float32)
    m0 = jax.nn.one_hot(i0, in_size, dtype=dtype) * (1.0 - frac)[:, None]
    m1 = jax.nn.one_hot(i1, in_size, dtype=dtype) * frac[:, None]
    return m0 + m1


def fold_conv_bn(w, gamma, beta, mean, var, eps=1e-5):
    """Fold Conv2d(1x1, bias=False) + BatchNorm2d(eval) into (weight, bias)."""
    scale = gamma / jnp.sqrt(var + eps)          # (mid,)
    w_f = w * scale[:, None]                     # (mid, in)
    b_f = beta - scale * mean                    # (mid,)
    return w_f, b_f


def pagfm_pallas(x, y, wx, bx, wy, by, *, h_tile=8):
    B, C, H, W = x.shape
    _, _, Hy, Wy = y.shape
    MID = wx.shape[0]

    # Fall back to a single spatial tile if the requested tile would not give
    # TPU-friendly (sublane, lane) block shapes.
    if H % h_tile or h_tile % 8 or (h_tile * W) % 128:
        h_tile = H

    ah = bilinear_matrix(H, Hy)          # (H, Hy)
    awt = bilinear_matrix(W, Wy).T       # (Wy, W)

    x_flat = x.reshape(B, C, H * W)      # free view; h-major spatial flatten

    out_flat = pl.pallas_call(
        pagfm_kernel,
        out_shape=jax.ShapeDtypeStruct((B, C, H * W), x.dtype),
        grid=(B, H // h_tile),
        in_specs=[
            pl.BlockSpec((1, C, h_tile * W), lambda b, t: (b, 0, t)),
            pl.BlockSpec((1, C, Hy, Wy), lambda b, t: (b, 0, 0, 0)),
            pl.BlockSpec((h_tile, Hy), lambda b, t: (t, 0)),
            pl.BlockSpec((Wy, W), lambda b, t: (0, 0)),
            pl.BlockSpec((MID, C), lambda b, t: (0, 0)),
            pl.BlockSpec((MID, 1), lambda b, t: (0, 0)),
            pl.BlockSpec((MID, C), lambda b, t: (0, 0)),
            pl.BlockSpec((MID, 1), lambda b, t: (0, 0)),
        ],
        out_specs=pl.BlockSpec((1, C, h_tile * W), lambda b, t: (b, 0, t)),
        scratch_shapes=[
            pltpu.VMEM((C, h_tile, Wy), jnp.float32),
            pltpu.VMEM((C, h_tile * W), jnp.float32),
        ],
        compiler_params=pltpu.CompilerParams(
            dimension_semantics=("parallel", "parallel"),
            vmem_limit_bytes=48 * 1024 * 1024,
        ),
    )(x_flat, y, ah, awt, wx, bx.reshape(MID, 1), wy, by.reshape(MID, 1))
    return out_flat.reshape(B, C, H, W)


def pagfm_ref(x, y, wx, bx, wy, by):
    """Pure-JAX reference with the original op order (for verification)."""
    B, C, H, W = x.shape
    _, _, Hy, Wy = y.shape
    ah = bilinear_matrix(H, Hy)
    aw = bilinear_matrix(W, Wy)
    xk = jnp.einsum('mc,bchw->bmhw', wx, x) + bx.reshape(1, -1, 1, 1)
    yq = jnp.einsum('mc,bchw->bmhw', wy, y) + by.reshape(1, -1, 1, 1)
    yq_up = jnp.einsum('hH,bmHW,wW->bmhw', ah, yq, aw)
    y_up = jnp.einsum('hH,bcHW,wW->bchw', ah, y, aw)
    sim = jax.nn.sigmoid(jnp.sum(xk * yq_up, axis=1, keepdims=True))
    return (1.0 - sim) * x + sim * y_up


# --------------------------------- main ------------------------------------- #
if __name__ == "__main__":
    key = jax.random.PRNGKey(0)
    B, C, MID = 2, 4, 2
    H, W = 16, 16          # high-res branch (x)
    Hy, Wy = 8, 8          # low-res branch (y)

    ks = jax.random.split(key, 12)
    x = jax.random.normal(ks[0], (B, C, H, W), jnp.float32)
    y = jax.random.normal(ks[1], (B, C, Hy, Wy), jnp.float32)

    # f_x: Conv2d(C, MID, 1, bias=False) + BN(MID); f_y likewise.
    wx_conv = jax.random.normal(ks[2], (MID, C), jnp.float32) * 0.3
    wy_conv = jax.random.normal(ks[3], (MID, C), jnp.float32) * 0.3
    gx = 0.5 + jax.random.uniform(ks[4], (MID,), jnp.float32)
    bx_bn = 0.1 * jax.random.normal(ks[5], (MID,), jnp.float32)
    mx = 0.1 * jax.random.normal(ks[6], (MID,), jnp.float32)
    vx = 0.5 + jax.random.uniform(ks[7], (MID,), jnp.float32)
    gy = 0.5 + jax.random.uniform(ks[8], (MID,), jnp.float32)
    by_bn = 0.1 * jax.random.normal(ks[9], (MID,), jnp.float32)
    my = 0.1 * jax.random.normal(ks[10], (MID,), jnp.float32)
    vy = 0.5 + jax.random.uniform(ks[11], (MID,), jnp.float32)

    wx, bx = fold_conv_bn(wx_conv, gx, bx_bn, mx, vx)
    wy, by = fold_conv_bn(wy_conv, gy, by_bn, my, vy)

    out = pagfm_pallas(x, y, wx, bx, wy, by)
    out = jax.block_until_ready(out)

    ref = pagfm_ref(x, y, wx, bx, wy, by)
    assert out.shape == (B, C, H, W)
    assert jnp.allclose(out, ref, atol=1e-4, rtol=1e-4), (
        f"max abs diff = {jnp.max(jnp.abs(out - ref))}")

    print("KERNEL_OK")
</pallas_src>

<mosaic_0001>
module attributes {stable_mosaic.version = 11 : i64} {
  func.func @pagfm_kernel(%arg0: i32, %arg1: i32, %arg2: memref<1x4x128xf32, #tpu.memory_space<vmem>>, %arg3: memref<1x4x8x8xf32, #tpu.memory_space<vmem>>, %arg4: memref<8x8xf32, #tpu.memory_space<vmem>>, %arg5: memref<8x16xf32, #tpu.memory_space<vmem>>, %arg6: memref<2x4xf32, #tpu.memory_space<vmem>>, %arg7: memref<2x1xf32, #tpu.memory_space<vmem>>, %arg8: memref<2x4xf32, #tpu.memory_space<vmem>>, %arg9: memref<2x1xf32, #tpu.memory_space<vmem>>, %arg10: memref<1x4x128xf32, #tpu.memory_space<vmem>>, %arg11: memref<4x8x8xf32, #tpu.memory_space<vmem>>, %arg12: memref<4x128xf32, #tpu.memory_space<vmem>>) attributes {dimension_semantics = [#tpu.dimension_semantics<parallel>, #tpu.dimension_semantics<parallel>], iteration_bounds = array<i64: 2, 2>, scalar_prefetch = 0 : i64, scratch_operands = 2 : i64, tpu.core_type = #tpu.core_type<tc>, window_params = [{transform_indices = @transform_0, window_bounds = array<i64: 1, 4, 128>}, {transform_indices = @transform_1, window_bounds = array<i64: 1, 4, 8, 8>}, {transform_indices = @transform_2, window_bounds = array<i64: 8, 8>}, {pipeline_mode = #tpu.pipeline_mode<synchronous>, transform_indices = @transform_3, window_bounds = array<i64: 8, 16>}, {pipeline_mode = #tpu.pipeline_mode<synchronous>, transform_indices = @transform_4, window_bounds = array<i64: 2, 4>}, {pipeline_mode = #tpu.pipeline_mode<synchronous>, transform_indices = @transform_5, window_bounds = array<i64: 2, 1>}, {pipeline_mode = #tpu.pipeline_mode<synchronous>, transform_indices = @transform_6, window_bounds = array<i64: 2, 4>}, {pipeline_mode = #tpu.pipeline_mode<synchronous>, transform_indices = @transform_7, window_bounds = array<i64: 2, 1>}, {transform_indices = @transform_8, window_bounds = array<i64: 1, 4, 128>}]} {
    %c0 = arith.constant 0 : index
    %c0_0 = arith.constant 0 : index
    %c0_1 = arith.constant 0 : index
    %0 = vector.load %arg2[%c0, %c0_0, %c0_1] : memref<1x4x128xf32, #tpu.memory_space<vmem>>, vector<1x4x128xf32>
    %1 = vector.shape_cast %0 : vector<1x4x128xf32> to vector<4x128xf32>
    %c0_2 = arith.constant 0 : index
    %c0_3 = arith.constant 0 : index
    %c0_4 = arith.constant 0 : index
    %c0_5 = arith.constant 0 : index
    %2 = vector.load %arg3[%c0_2, %c0_3, %c0_4, %c0_5] : memref<1x4x8x8xf32, #tpu.memory_space<vmem>>, vector<1x4x8x8xf32>
    %3 = vector.shape_cast %2 : vector<1x4x8x8xf32> to vector<4x8x8xf32>
    %c0_6 = arith.constant 0 : index
    %c0_7 = arith.constant 0 : index
    %4 = vector.load %arg5[%c0_6, %c0_7] : memref<8x16xf32, #tpu.memory_space<vmem>>, vector<8x16xf32>
    %c0_8 = arith.constant 0 : index
    %c0_9 = arith.constant 0 : index
    %5 = vector.load %arg4[%c0_8, %c0_9] : memref<8x8xf32, #tpu.memory_space<vmem>>, vector<8x8xf32>
    %6 = vector.shape_cast %5 : vector<8x8xf32> to vector<1x8x8xf32>
    %7 = vector.shape_cast %6 : vector<1x8x8xf32> to vector<1x8x8xf32>
    %8 = vector.broadcast %7 : vector<1x8x8xf32> to vector<4x8x8xf32>
    "tpu.trace_start"() <{level = 10 : i32, message = "chk,ckv->chv"}> : () -> ()
    %cst = arith.constant dense<0.000000e+00> : vector<4x8x8xf32>
    %9 = tpu.matmul %8, %3, %cst {dimension_numbers = #tpu.dot_dimension_numbers<[2], [1], [1], [2], [0, 0, 0, 1, 1, 2], [0], [0]>} : vector<4x8x8xf32>, vector<4x8x8xf32>, vector<4x8x8xf32> -> vector<4x8x8xf32>
    "tpu.trace_stop"() : () -> ()
    %c0_10 = arith.constant 0 : index
    %c0_11 = arith.constant 0 : index
    %c0_12 = arith.constant 0 : index
    %10 = vector.load %arg11[%c0_10, %c0_11, %c0_12] : memref<4x8x8xf32, #tpu.memory_space<vmem>>, vector<4x8x8xf32>
    tpu.vector_store %arg11[%c0_10, %c0_11, %c0_12], %9 {strides = array<i32>} : memref<4x8x8xf32, #tpu.memory_space<vmem>>, vector<4x8x8xf32>,
    %c0_13 = arith.constant 0 : index
    %c0_14 = arith.constant 0 : index
    %c0_15 = arith.constant 0 : index
    %11 = vector.load %arg11[%c0_13, %c0_14, %c0_15] : memref<4x8x8xf32, #tpu.memory_space<vmem>>, vector<4x1x8xf32>
    %12 = vector.shape_cast %11 : vector<4x1x8xf32> to vector<4x8xf32>
    %cst_16 = arith.constant dense<0.000000e+00> : vector<4x16xf32>
    %13 = tpu.matmul %12, %4, %cst_16 {dimension_numbers = #tpu.dot_dimension_numbers<[1], [0], [0], [1], [0, 0, 1, 1], [], []>} : vector<4x8xf32>, vector<8x16xf32>, vector<4x16xf32> -> vector<4x16xf32>
    %c0_17 = arith.constant 0 : index
    %c0_18 = arith.constant 0 : index
    %14 = vector.load %arg12[%c0_17, %c0_18] : memref<4x128xf32, #tpu.memory_space<vmem>>, vector<4x16xf32>
    tpu.vector_store %arg12[%c0_17, %c0_18], %13 {strides = array<i32>} : memref<4x128xf32, #tpu.memory_space<vmem>>, vector<4x16xf32>,
    %c0_19 = arith.constant 0 : index
    %c1 = arith.constant 1 : index
    %c0_20 = arith.constant 0 : index
    %15 = vector.load %arg11[%c0_19, %c1, %c0_20] : memref<4x8x8xf32, #tpu.memory_space<vmem>>, vector<4x1x8xf32>
    %16 = vector.shape_cast %15 : vector<4x1x8xf32> to vector<4x8xf32>
    %cst_21 = arith.constant dense<0.000000e+00> : vector<4x16xf32>
    %17 = tpu.matmul %16, %4, %cst_21 {dimension_numbers = #tpu.dot_dimension_numbers<[1], [0], [0], [1], [0, 0, 1, 1], [], []>} : vector<4x8xf32>, vector<8x16xf32>, vector<4x16xf32> -> vector<4x16xf32>
    %c0_22 = arith.constant 0 : index
    %c16 = arith.constant 16 : index
    %18 = vector.load %arg12[%c0_22, %c16] : memref<4x128xf32, #tpu.memory_space<vmem>>, vector<4x16xf32>
    tpu.vector_store %arg12[%c0_22, %c16], %17 {strides = array<i32>} : memref<4x128xf32, #tpu.memory_space<vmem>>, vector<4x16xf32>,
    %c0_23 = arith.constant 0 : index
    %c2 = arith.constant 2 : index
    %c0_24 = arith.constant 0 : index
    %19 = vector.load %arg11[%c0_23, %c2, %c0_24] : memref<4x8x8xf32, #tpu.memory_space<vmem>>, vector<4x1x8xf32>
    %20 = vector.shape_cast %19 : vector<4x1x8xf32> to vector<4x8xf32>
    %cst_25 = arith.constant dense<0.000000e+00> : vector<4x16xf32>
    %21 = tpu.matmul %20, %4, %cst_25 {dimension_numbers = #tpu.dot_dimension_numbers<[1], [0], [0], [1], [0, 0, 1, 1], [], []>} : vector<4x8xf32>, vector<8x16xf32>, vector<4x16xf32> -> vector<4x16xf32>
    %c0_26 = arith.constant 0 : index
    %c32 = arith.constant 32 : index
    %22 = vector.load %arg12[%c0_26, %c32] : memref<4x128xf32, #tpu.memory_space<vmem>>, vector<4x16xf32>
    tpu.vector_store %arg12[%c0_26, %c32], %21 {strides = array<i32>} : memref<4x128xf32, #tpu.memory_space<vmem>>, vector<4x16xf32>,
    %c0_27 = arith.constant 0 : index
    %c3 = arith.constant 3 : index
    %c0_28 = arith.constant 0 : index
    %23 = vector.load %arg11[%c0_27, %c3, %c0_28] : memref<4x8x8xf32, #tpu.memory_space<vmem>>, vector<4x1x8xf32>
    %24 = vector.shape_cast %23 : vector<4x1x8xf32> to vector<4x8xf32>
    %cst_29 = arith.constant dense<0.000000e+00> : vector<4x16xf32>
    %25 = tpu.matmul %24, %4, %cst_29 {dimension_numbers = #tpu.dot_dimension_numbers<[1], [0], [0], [1], [0, 0, 1, 1], [], []>} : vector<4x8xf32>, vector<8x16xf32>, vector<4x16xf32> -> vector<4x16xf32>
    %c0_30 = arith.constant 0 : index
    %c48 = arith.constant 48 : index
    %26 = vector.load %arg12[%c0_30, %c48] : memref<4x128xf32, #tpu.memory_space<vmem>>, vector<4x16xf32>
    tpu.vector_store %arg12[%c0_30, %c48], %25 {strides = array<i32>} : memref<4x128xf32, #tpu.memory_space<vmem>>, vector<4x16xf32>,
    %c0_31 = arith.constant 0 : index
    %c4 = arith.constant 4 : index
    %c0_32 = arith.constant 0 : index
    %27 = vector.load %arg11[%c0_31, %c4, %c0_32] : memref<4x8x8xf32, #tpu.memory_space<vmem>>, vector<4x1x8xf32>
    %28 = vector.shape_cast %27 : vector<4x1x8xf32> to vector<4x8xf32>
    %cst_33 = arith.constant dense<0.000000e+00> : vector<4x16xf32>
    %29 = tpu.matmul %28, %4, %cst_33 {dimension_numbers = #tpu.dot_dimension_numbers<[1], [0], [0], [1], [0, 0, 1, 1], [], []>} : vector<4x8xf32>, vector<8x16xf32>, vector<4x16xf32> -> vector<4x16xf32>
    %c0_34 = arith.constant 0 : index
    %c64 = arith.constant 64 : index
    %30 = vector.load %arg12[%c0_34, %c64] : memref<4x128xf32, #tpu.memory_space<vmem>>, vector<4x16xf32>
    tpu.vector_store %arg12[%c0_34, %c64], %29 {strides = array<i32>} : memref<4x128xf32, #tpu.memory_space<vmem>>, vector<4x16xf32>,
    %c0_35 = arith.constant 0 : index
    %c5 = arith.constant 5 : index
    %c0_36 = arith.constant 0 : index
    %31 = vector.load %arg11[%c0_35, %c5, %c0_36] : memref<4x8x8xf32, #tpu.memory_space<vmem>>, vector<4x1x8xf32>
    %32 = vector.shape_cast %31 : vector<4x1x8xf32> to vector<4x8xf32>
    %cst_37 = arith.constant dense<0.000000e+00> : vector<4x16xf32>
    %33 = tpu.matmul %32, %4, %cst_37 {dimension_numbers = #tpu.dot_dimension_numbers<[1], [0], [0], [1], [0, 0, 1, 1], [], []>} : vector<4x8xf32>, vector<8x16xf32>, vector<4x16xf32> -> vector<4x16xf32>
    %c0_38 = arith.constant 0 : index
    %c80 = arith.constant 80 : index
    %34 = vector.load %arg12[%c0_38, %c80] : memref<4x128xf32, #tpu.memory_space<vmem>>, vector<4x16xf32>
    tpu.vector_store %arg12[%c0_38, %c80], %33 {strides = array<i32>} : memref<4x128xf32, #tpu.memory_space<vmem>>, vector<4x16xf32>,
    %c0_39 = arith.constant 0 : index
    %c6 = arith.constant 6 : index
    %c0_40 = arith.constant 0 : index
    %35 = vector.load %arg11[%c0_39, %c6, %c0_40] : memref<4x8x8xf32, #tpu.memory_space<vmem>>, vector<4x1x8xf32>
    %36 = vector.shape_cast %35 : vector<4x1x8xf32> to vector<4x8xf32>
    %cst_41 = arith.constant dense<0.000000e+00> : vector<4x16xf32>
    %37 = tpu.matmul %36, %4, %cst_41 {dimension_numbers = #tpu.dot_dimension_numbers<[1], [0], [0], [1], [0, 0, 1, 1], [], []>} : vector<4x8xf32>, vector<8x16xf32>, vector<4x16xf32> -> vector<4x16xf32>
    %c0_42 = arith.constant 0 : index
    %c96 = arith.constant 96 : index
    %38 = vector.load %arg12[%c0_42, %c96] : memref<4x128xf32, #tpu.memory_space<vmem>>, vector<4x16xf32>
    tpu.vector_store %arg12[%c0_42, %c96], %37 {strides = array<i32>} : memref<4x128xf32, #tpu.memory_space<vmem>>, vector<4x16xf32>,
    %c0_43 = arith.constant 0 : index
    %c7 = arith.constant 7 : index
    %c0_44 = arith.constant 0 : index
    %39 = vector.load %arg11[%c0_43, %c7, %c0_44] : memref<4x8x8xf32, #tpu.memory_space<vmem>>, vector<4x1x8xf32>
    %40 = vector.shape_cast %39 : vector<4x1x8xf32> to vector<4x8xf32>
    %cst_45 = arith.constant dense<0.000000e+00> : vector<4x16xf32>
    %41 = tpu.matmul %40, %4, %cst_45 {dimension_numbers = #tpu.dot_dimension_numbers<[1], [0], [0], [1], [0, 0, 1, 1], [], []>} : vector<4x8xf32>, vector<8x16xf32>, vector<4x16xf32> -> vector<4x16xf32>
    %c0_46 = arith.constant 0 : index
    %c112 = arith.constant 112 : index
    %42 = vector.load %arg12[%c0_46, %c112] : memref<4x128xf32, #tpu.memory_space<vmem>>, vector<4x16xf32>
    tpu.vector_store %arg12[%c0_46, %c112], %41 {strides = array<i32>} : memref<4x128xf32, #tpu.memory_space<vmem>>, vector<4x16xf32>,
    %c0_47 = arith.constant 0 : index
    %c0_48 = arith.constant 0 : index
    %43 = vector.load %arg12[%c0_47, %c0_48] : memref<4x128xf32, #tpu.memory_space<vmem>>, vector<4x128xf32>
    %c0_49 = arith.constant 0 : index
    %c0_50 = arith.constant 0 : index
    %44 = vector.load %arg6[%c0_49, %c0_50] : memref<2x4xf32, #tpu.memory_space<vmem>>, vector<2x4xf32>
    %cst_51 = arith.constant dense<0.000000e+00> : vector<2x128xf32>
    %45 = tpu.matmul %44, %1, %cst_51 {dimension_numbers = #tpu.dot_dimension_numbers<[1], [0], [0], [1], [0, 0, 1, 1], [], []>} : vector<2x4xf32>, vector<4x128xf32>, vector<2x128xf32> -> vector<2x128xf32>
    %c0_52 = arith.constant 0 : index
    %c0_53 = arith.constant 0 : index
    %46 = vector.load %arg7[%c0_52, %c0_53] : memref<2x1xf32, #tpu.memory_space<vmem>>, vector<2x1xf32>
    %47 = vector.broadcast %46 : vector<2x1xf32> to vector<2x128xf32>
    %48 = arith.addf %45, %47 : vector<2x128xf32>
    %c0_54 = arith.constant 0 : index
    %c0_55 = arith.constant 0 : index
    %49 = vector.load %arg8[%c0_54, %c0_55] : memref<2x4xf32, #tpu.memory_space<vmem>>, vector<2x4xf32>
    %cst_56 = arith.constant dense<0.000000e+00> : vector<2x128xf32>
    %50 = tpu.matmul %49, %43, %cst_56 {dimension_numbers = #tpu.dot_dimension_numbers<[1], [0], [0], [1], [0, 0, 1, 1], [], []>} : vector<2x4xf32>, vector<4x128xf32>, vector<2x128xf32> -> vector<2x128xf32>
    %c0_57 = arith.constant 0 : index
    %c0_58 = arith.constant 0 : index
    %51 = vector.load %arg9[%c0_57, %c0_58] : memref<2x1xf32, #tpu.memory_space<vmem>>, vector<2x1xf32>
    %52 = vector.broadcast %51 : vector<2x1xf32> to vector<2x128xf32>
    %53 = arith.addf %50, %52 : vector<2x128xf32>
    %54 = arith.mulf %48, %53 : vector<2x128xf32>
    %cst_59 = arith.constant dense<0.000000e+00> : vector<128xf32>
    %55 = vector.multi_reduction <add>, %54, %cst_59 [0] : vector<2x128xf32> to vector<128xf32>
    %56 = vector.shape_cast %55 : vector<128xf32> to vector<1x128xf32>
    %57 = arith.negf %56 : vector<1x128xf32>
    %58 = math.exp %57 : vector<1x128xf32>
    %cst_60 = arith.constant 1.000000e+00 : f32
    %59 = vector.broadcast %cst_60 : f32 to vector<1x128xf32>
    %60 = arith.addf %59, %58 : vector<1x128xf32>
    %61 = arith.divf %59, %60 : vector<1x128xf32>
    %cst_61 = arith.constant 1.000000e+00 : f32
    %62 = vector.broadcast %cst_61 : f32 to vector<1x128xf32>
    %63 = arith.subf %62, %61 : vector<1x128xf32>
    %64 = vector.broadcast %63 : vector<1x128xf32> to vector<4x128xf32>
    %65 = arith.mulf %64, %1 : vector<4x128xf32>
    %66 = vector.broadcast %61 : vector<1x128xf32> to vector<4x128xf32>
    %67 = arith.mulf %66, %43 : vector<4x128xf32>
    %68 = arith.addf %65, %67 : vector<4x128xf32>
    %c0_62 = arith.constant 0 : index
    %c0_63 = arith.constant 0 : index
    %c0_64 = arith.constant 0 : index
    %69 = vector.load %arg10[%c0_62, %c0_63, %c0_64] : memref<1x4x128xf32, #tpu.memory_space<vmem>>, vector<1x4x128xf32>
    %70 = vector.shape_cast %69 : vector<1x4x128xf32> to vector<4x128xf32>
    %71 = vector.shape_cast %68 : vector<4x128xf32> to vector<1x4x128xf32>
    tpu.vector_store %arg10[%c0_62, %c0_63, %c0_64], %71 {strides = array<i32>} : memref<1x4x128xf32, #tpu.memory_space<vmem>>, vector<1x4x128xf32>,
    return
  }
  func.func @transform_0(%arg0: i32, %arg1: i32) -> (i32, i32, i32) {
    %c0_i32 = arith.constant 0 : i32
    %c0_i32_0 = arith.constant 0 : i32
    return %arg0, %c0_i32, %arg1 : i32, i32, i32
  }
  func.func @transform_1(%arg0: i32, %arg1: i32) -> (i32, i32, i32, i32) {
    %c0_i32 = arith.constant 0 : i32
    %c0_i32_0 = arith.constant 0 : i32
    %c0_i32_1 = arith.constant 0 : i32
    %c0_i32_2 = arith.constant 0 : i32
    return %arg0, %c0_i32, %c0_i32_0, %c0_i32_1 : i32, i32, i32, i32
  }
  func.func @transform_2(%arg0: i32, %arg1: i32) -> (i32, i32) {
    %c0_i32 = arith.constant 0 : i32
    %c0_i32_0 = arith.constant 0 : i32
    return %arg1, %c0_i32 : i32, i32
  }
  func.func @transform_3(%arg0: i32, %arg1: i32) -> (i32, i32) {
    %c0_i32 = arith.constant 0 : i32
    %c0_i32_0 = arith.constant 0 : i32
    %c0_i32_1 = arith.constant 0 : i32
    return %c0_i32, %c0_i32_0 : i32, i32
  }
  func.func @transform_4(%arg0: i32, %arg1: i32) -> (i32, i32) {
    %c0_i32 = arith.constant 0 : i32
    %c0_i32_0 = arith.constant 0 : i32
    %c0_i32_1 = arith.constant 0 : i32
    return %c0_i32, %c0_i32_0 : i32, i32
  }
  func.func @transform_5(%arg0: i32, %arg1: i32) -> (i32, i32) {
    %c0_i32 = arith.constant 0 : i32
    %c0_i32_0 = arith.constant 0 : i32
    %c0_i32_1 = arith.constant 0 : i32
    return %c0_i32, %c0_i32_0 : i32, i32
  }
  func.func @transform_6(%arg0: i32, %arg1: i32) -> (i32, i32) {
    %c0_i32 = arith.constant 0 : i32
    %c0_i32_0 = arith.constant 0 : i32
    %c0_i32_1 = arith.constant 0 : i32
    return %c0_i32, %c0_i32_0 : i32, i32
  }
  func.func @transform_7(%arg0: i32, %arg1: i32) -> (i32, i32) {
    %c0_i32 = arith.constant 0 : i32
    %c0_i32_0 = arith.constant 0 : i32
    %c0_i32_1 = arith.constant 0 : i32
    return %c0_i32, %c0_i32_0 : i32, i32
  }
  func.func @transform_8(%arg0: i32, %arg1: i32) -> (i32, i32, i32) {
    %c0_i32 = arith.constant 0 : i32
    %c0_i32_0 = arith.constant 0 : i32
    return %arg0, %c0_i32, %arg1 : i32, i32, i32
  }
}

</mosaic_0001>

<bundles_post_ra>
// kernel: tpu_custom_call.1
= control target key start
LH: loop header
LB: loop body
LE: loop exit
PB: predicated region body
PF: predicated region fallthrough
CT: control target
= control target key end

     0   :  { %s2549_s0 = inlined_call_operand.vmem [shape: f32[2,4,256], index: 0, kind: input, shape index: {}]   ;;  %s2550_s1 = inlined_call_operand.hbm [shape: f32[2,4,8,8], index: 1, kind: input, shape index: {}]   ;;  %s2551_s2 = inlined_call_operand.vmem [shape: f32[16,8], index: 2, kind: input, shape index: {}]   ;;  %s2552_s3 = inlined_call_operand.vmem [shape: f32[8,16], index: 3, kind: input, shape index: {}]   ;;  %s2553_s4 = inlined_call_operand.vmem [shape: f32[2,4], index: 4, kind: input, shape index: {}]   ;;  %s2554_s5 = inlined_call_operand.vmem [shape: f32[2,1], index: 5, kind: input, shape index: {}]   ;;  %s2555_s6 = inlined_call_operand.vmem [shape: f32[2,4], index: 6, kind: input, shape index: {}]   ;;  %s2556_s7 = inlined_call_operand.vmem [shape: f32[2,1], index: 7, kind: input, shape index: {}]   ;;  %s2557_s8 = inlined_call_operand.hbm [shape: f32[2,4,256], index: 8, kind: output, shape index: {}]  }
   0x1   :  { %2564 = sst [smem:[#allocation14_spill]] %s2555_s6 }
   0x2   :  { %2565 = sst [smem:[#allocation15_spill]] %s2557_s8 }
   0x3   :  { %13 = vsyncpa [#allocation5], 0 }
   0x4   :  { %15 = vsyncpa [#allocation5 + $0x1], 0 }
   0x5   :  { %16 = vsyncpa [#allocation6], 0 }
   0x6   :  { %18 = vsyncpa [#allocation6 + $0x1], 0  ;;  %s2201_s27 = smov 0   ;;  %s2203_s28 = smov 0  }
   0x7   :  { %s2205_s29 = smov 0   ;;  %s2207_s30 = smov 0  }
   0x8   :  { %s2209_s9 = smov 0   ;;  %s2211_s10 = smov 0  }
   0x9   :  { %s2213_s11 = smov 0   ;;  %s2215_s12 = smov 0  }
   0xa   :  { %s2217_s13 = smov 0   ;;  %s2219_s14 = smov 0  }
   0xb   :  { %s2221_s15 = smov 0  }
   0xc LB: > { %2566 = sst [smem:[#allocation10_spill]] %s2132_s13  ;;  %s1734_s16 = sadd.s32 4294967295, %s2140_s15   ;;  %s2140_s15 = sphi %s2221_s15, %s24_s15   ;;  %s2136_s14 = sphi %s2219_s14, %s2591_s14   ;;  %s2132_s13 = sphi %s2217_s13, %s2590_s13   ;;  %s2128_s12 = sphi %s2215_s12, %s2581_s12   ;;  %s2124_s11 = sphi %s2213_s11, %s2580_s11   ;;  %s2120_s10 = sphi %s2211_s10, %s2589_s10   ;;  %s2116_s9 = sphi %s2209_s9, %s2588_s9   ;;  %s2112_s30 = sphi %s2207_s30, %s2587_s30   ;;  %s2108_s29 = sphi %s2205_s29, %s2586_s29   ;;  %s2104_s28 = sphi %s2203_s28, %s2585_s28   ;;  %s2100_s27 = sphi %s2201_s27, %s2584_s27  }
   0xd   : > { %2567 = sst [smem:[#allocation11_spill]] %s2136_s14  ;;  %s1735_s17 = sadd.s32 4294967294, %s2140_s15  }
   0xe   : > { %s33_s18 = sadd.s32 1, %s2132_s13  ;;  %s36_s19 = sadd.s32 1, %s2136_s14 }
   0xf   : > { %p34_p0 = scmp.ge.s32.totalorder %s33_s18, 2  ;;  %s71_s20 = sadd.s32 1, %s2120_s10 }
  0x10   : > { %p78_p1 = scmp.ne.s32.totalorder %s2120_s10, %s2116_s9  ;;  %p79_p2 = scmp.eq.s32.totalorder %s2140_s15, 0 }
  0x11   : > { %s2593_s18 = smov (%p34_p0, %s33_s18), 0  ;;  %s2595_s19 = smov (!%p34_p0, %s36_s19), %s2136_s14 }
  0x12   : > { %2568 = sst [smem:[#allocation12_spill]] %s2593_s18  ;;  %p2265_p3 = por %p79_p2, %p78_p1 }
  0x13   : > { %p84_p4 = scmp.ne.s32.totalorder %s2116_s9, %s2112_s30  ;;  %p38_p5 = scmp.ge.s32.totalorder %s2595_s19, 2 }
  0x14   : > { %p85_p6 = scmp.eq.s32.totalorder %s1734_s16, 0  ;;  %s226_s22 = ssub.s32 %s2132_s13, %s2593_s18 }
  0x15   : > { %s230_s23 = sadd.s32 1, %s2108_s29  ;;  %s2597_s19 = smov (%p38_p5, %s2595_s19), 0 }
  0x16   : > { %2570 = sst [smem:[#allocation13_spill]] %s2597_s19  ;;  %p2275_p7 = por %p85_p6, %p84_p4 }
  0x17   : > { %p240_p8 = scmp.ne.s32.totalorder %s2108_s29, %s2104_s28  ;;  %s68_s25 = ssub.s32 %s2136_s14, %s2597_s19 }
  0x18   : > { %p241_p9 = scmp.eq.s32.totalorder %s1734_s16, 3  ;;  %p69_p10 = scmp.eq.s32.totalorder %s68_s25, 0 }
  0x19   : > { %s227_s26 = sor.u32 %s226_s22, %s68_s25  ;;  %p246_p13 = scmp.ne.s32.totalorder %s2104_s28, %s2100_s27 }
  0x1a   : > { %p228_p11 = scmp.eq.s32.totalorder %s227_s26, 0  ;;  %p2283_p12 = por %p241_p9, %p240_p8 }
  0x1b   : > { %s2288_s18 = scalar_select %p69_p10, %s2120_s10, %s71_s20  }
  0x1c   : > { %s2572_s30 = scalar_select %p2283_p12, 1, 0 }
  0x1d   : > { %s2291_s13 = scalar_select %p228_p11, %s2108_s29, %s230_s23  }
  0x1e   : > { %p247_p0 = scmp.eq.s32.totalorder %s1735_s17, 3  ;;  %p1880_p1 = scmp.lt.s32.totalorder %s2140_s15, 4 }
  0x1f   : > { %s293_s16 = sand.u32 1, %s2120_s10   ;;  %s1769_s25 = sshll.u32 %s2136_s14, 9 }
  0x20   : > { %p2296_p2 = por %p247_p0, %p246_p13  ;;  %s1738_s22 = sshll.u32 %s293_s16, 5 }
  0x21   : > { %s2305_s6 = scalar_lea.hbm %s2550_s1, %s1769_s25  ;;  %s297_s20 = scalar_lea.vmem [#allocation4], %s1738_s22 }
  0x22   : > { %s2573_s8 = scalar_select %p2296_p2, 1, 0 }
  0x23   : > { %s304_s23 = sshll.u32 %s297_s20, 4  ;;  %p2311_p4 = pnand %p1880_p1, %p2265_p3  ;;  %s2307_s23 = int_to_ptr.vmem [resolvable:$true] %s304_s23 }
  0x24   : > { %s2316_s14 = scalar_lea.sflag [#allocation5], %s293_s16  ;;  %s1988_s19 = scalar_lea.hbm %s2305_s6, 512 }
  0x25   : > { %p1989_p6 = scmp.ne.s32.totalorder %s2305_s6, %s1988_s19  ;;  %p1990_p8 = pneg %p2311_p4 }
  0x26   : > { %s1993_s21 = scalar_lea.hbm %s2550_s1, 1024  ;;  %p1994_p3 = scmp.lt.u32.totalorder %s2305_s6, %s2550_s1 }
  0x27   : > { %p1991_p9 = pnand %p1990_p8, %p1989_p6  ;;  %p1995_p11 = scmp.lt.u32.totalorder %s1993_s21, %s1988_s19 }
  0x28   : > { %p1997_p0 = scmp.lt.u32.totalorder %s1988_s19, %s2305_s6 }
  0x29   : > { %p1992_p10 = pneg %p1991_p9  ;;  %p1996_p13 = por %p1995_p11, %p1994_p3 }
  0x2b   : > { %p1998_p1 = por %p1997_p0, %p1996_p13 }
  0x2d   : > { %p1999_p5 = pnand %p1998_p1, %p1992_p10 }
  0x2f   : > { %2002 = shalt.err (!%p1999_p5)
}
  0x30   : > { %s2003_s16 = scalar_lea.vmem %s2307_s23, 512  ;;  %s2142_s22 = smov [#allocation4]  }
  0x31   : > { %p2004_p6 = scmp.ne.s32.totalorder %s2307_s23, %s2003_s16  ;;  %s2008_s25 = sshll.u32 %s2142_s22, 4  ;;  %s2009_s25 = int_to_ptr.vmem [resolvable:$false] %s2008_s25 }
  0x32   : > { %s2010_s26 = scalar_lea.vmem %s2009_s25, 1024  ;;  %p2011_p12 = scmp.lt.s32.totalorder %s2307_s23, %s2009_s25 }
  0x33   : > { %p2006_p9 = pnand %p2004_p6, %p1990_p8  ;;  %p2012_p3 = scmp.lt.s32.totalorder %s2010_s26, %s2003_s16 }
  0x35   : > { %p2007_p2 = pneg %p2006_p9  ;;  %p2013_p11 = por %p2012_p3, %p2011_p12 }
  0x37   : > { %p2014_p13 = pnand %p2013_p11, %p2007_p2 }
  0x39   : > { %2017 = shalt.err (!%p2014_p13)
}
  0x3a   : > { %s2143_s19 = smov 128   ;;  %s2144_s21 = smov 8  }
  0x3b   : > { %1875 = dma.hbm_to_vmem [thread:$0]  (!%p2311_p4), %s2305_s6, 512, %s2307_s23, %s2316_s14, %s2143_s19, %s2143_s19, %s2144_s21  }
  0x3c   : > { %p319_p5 = scmp.lt.s32.totalorder %s2140_s15, 5  ;;  %p2575_p8 = scmp.ge.s32.totalorder %s2140_s15, 1 }
  0x3e   : > { %p320_p10 = pnand %p2575_p8, %p319_p5 }
  0x3f   : > { %s325_s20 = sand.u32 (!%p320_p10), 1, %s2116_s9  }
  0x40   : > { %323 = sbr.rel (%p320_p10) target bundleno = 931 (0x3a3), region = 52  ;;  %s1742_s16 = sshll.u32 (!%p320_p10), %s325_s20, 5 }
  0x41   : > { %s326_s22 = scalar_lea.sflag (!%p320_p10), [#allocation5], %s325_s20  ;;  %s329_s25 = scalar_lea.vmem (!%p320_p10), [#allocation4], %s1742_s16 }
  0x47   : > { %2091 = dma.done.wait (%p2275_p7), %s326_s22, 512  }
  0x48   : > { %2093 = vsyncadd (%p2275_p7), %s326_s22, 4294966784  ;;  %p376_p12 = scmp.lt.s32.totalorder %s2124_s11, 1  ;;  %v2145_v0 = vmov 0.0   ;;  %vm2146_vm0 = vmmov 0   ;;  %vm393_vm1 = vcmask 64512   ;;  %v387_v1 = vld [vmem:[%s329_s25] sm:$0xff] }
  0x49   : > { %1798 = vmatprep.subr.mxu0 %v2145_v0  ;;  %1803 = vmatprep.subr.mxu1 %v2145_v0  ;;  %v388_v2 = vld [vmem:[%s329_s25 + $0x8] sm:$0xff]  ;;  %v389_v4 = vld [vmem:[%s329_s25 + $0x10] sm:$0xff]  ;;  %v390_v5 = vld [vmem:[%s329_s25 + $0x18] sm:$0xff]  ;;  %vm690_vm2 = vcmask 1041409   ;;  %vm693_vm3 = vcmask 1042434   ;;  %vm696_vm4 = vcmask 1043459  }
  0x4a   : > { %1800 = vmatprep.mubr.msk.f32.mxu0 %vm2146_vm0, %v2145_v0  ;;  %1805 = vmatprep.mubr.msk.f32.mxu1 %vm2146_vm0, %v2145_v0  ;;  %s2360_s6 = scalar_select %p376_p12, %s2124_s11, 1  ;;  %v2385_v6 = vld [vmem:[%s2552_s3] sm:$0xff]  ;;  %vm770_vm5 = vcmask 125952   ;;  %vm1428_vm6 = vcmask 1043456   ;;  %vm1424_vm7 = vcmask 31744   ;;  %vm862_vm8 = vcmask 257152  }
  0x4b   : > { %1799 = vmatpush3.msra.mxu0 %v387_v1  ;;  %1804 = vmatpush3.msra.mxu1 %v388_v2  ;;  %s2147_s21 = smov 16   ;;  %p374_p7 = scmp.lt.s32.totalorder %s2128_s12, 1  ;;  %vm954_vm9 = vcmask 388352   ;;  %vm1046_vm10 = vcmask 519552   ;;  %vm1138_vm11 = vcmask 650752   ;;  %vm1230_vm12 = vcmask 781952  }
  0x4c   : > { %s1746_s14 = sshll.u32 %s2360_s6, 3  ;;  %1808 = vmatprep.subr.mxu0 %v2145_v0  ;;  %1813 = vmatprep.subr.mxu1 %v2145_v0  ;;  %s2148_s16 = smov 48   ;;  %vm1322_vm13 = vcmask 913152   ;;  %vm1414_vm14 = vcmask 1044352   ;;  %vm1586_vm15 = vcmask 1041408  }
  0x4d   : > { %s385_s17 = scalar_lea.vmem %s2551_s2, %s1746_s14  ;;  %s2149_s22 = smov 32  }
  0x4e   : > { %v392_v3 = vld [vmem:[%s385_s17] sm:$0xff]  ;;  %s375_s20 = scalar_select %p374_p7, %s2128_s12, 1 }
  0x4f   : > { %1801 = vmatmul.mubr.msk.f32.vlgmr.msra.gmra.mrb[0].mxu0 %vm393_vm1, %v392_v3  ;;  %1806 = vmatmul.mubr.msk.f32.vlgmr.msra.gmra.mrb[0].mxu1 %vm393_vm1, %v392_v3  ;;  %s2150_s19 = smov 80   ;;  %s2577_s17 = sld [smem:[#allocation15_spill]] }
  0x50   : > { %1809 = vmatpush3.msra.mxu0 %v389_v4  ;;  %1810 = vmatprep.mubr.msk.f32.mxu0 %vm2146_vm0, %v2145_v0  ;;  %s1744_s25 = sshll.u32 %s375_s20, 1  ;;  %s2154_s20 = smov 96  }
  0x51   : > { %1814 = vmatpush3.msra.mxu1 %v390_v5  ;;  %1815 = vmatprep.mubr.msk.f32.mxu1 %vm2146_vm0, %v2145_v0  ;;  %s379_s14 = sadd.s32 %s1744_s25, %s2360_s6  ;;  %s2153_s6 = smov 112  }
  0x52   : > { %1818 = vmatprep.subr.mxu0 %v2145_v0  ;;  %1823 = vmatprep.subr.mxu1 %v2145_v0  ;;  %s1745_s24 = sshll.u32 %s379_s14, 2  ;;  %p2578_p4 = scmp.ne.s32.totalorder %s2572_s30, 0 }
  0x53   : > { %1811 = vmatmul.mubr.msk.f32.vlgmr.msra.gmra.mrb[2].mxu0 %vm393_vm1, %v392_v3  ;;  %1816 = vmatmul.mubr.msk.f32.vlgmr.msra.gmra.mrb[2].mxu1 %vm393_vm1, %v392_v3  ;;  %s381_s26 = scalar_lea.vmem %s2549_s0, %s1745_s24 }
  0x54   : > { %1820 = vmatprep.mubr.msk.f32.mxu0 %vm2146_vm0, %v2145_v0  ;;  %1825 = vmatprep.mubr.msk.f32.mxu1 %vm2146_vm0, %v2145_v0 }
  0x55   : > { %1819 = vmatpush3.msra.mxu0 %v2385_v6  ;;  %1824 = vmatpush3.msra.mxu1 %v2385_v6 }
  0x56   : > { %1828 = vmatprep.subr.mxu0 %v2145_v0  ;;  %1833 = vmatprep.subr.mxu1 %v2145_v0 }
 0x122   : > { %v463_v7 = vpop.f32.mrb[0].mxu0  ;;  %v533_v8 = vpop.f32.mrb[0].mxu1 }
 0x123   : > { %677 = vst.msk [vmem:[#allocation2] sm:$0xff] %vm393_vm1, %v463_v7  ;;  %678 = vst.msk [vmem:[#allocation2 + $0x8] sm:$0xff] %vm393_vm1, %v533_v8  ;;  %v1802_v9 = vpop.f32.mrb[1].mxu0  ;;  %v1807_v10 = vpop.f32.mrb[1].mxu1 }
 0x126   : > { %v603_v11 = vpop.f32.mrb[2].mxu0  ;;  %v673_v12 = vpop.f32.mrb[2].mxu1 }
 0x127   : > { %679 = vst.msk [vmem:[#allocation2 + $0x10] sm:$0xff] %vm393_vm1, %v603_v11  ;;  %680 = vst.msk [vmem:[#allocation2 + $0x18] sm:$0xff] %vm393_vm1, %v673_v12  ;;  %v1812_v13 = vpop.f32.mrb[3].mxu0  ;;  %v1817_v14 = vpop.f32.mrb[3].mxu1 }
 0x12a   : > { %v682_v15 = vld [vmem:[#allocation2 + $0x8] sm:$0x1]  ;;  %v773_v17 = vld [vmem:[#allocation2 + $0x9] sm:$0x1]  ;;  %v681_v18 = vld [vmem:[#allocation2] sm:$0x1] }
 0x12b   : > { %v689_v16 = vrot.slane %v682_v15, 7  ;;  %v780_v19 = vrot.slane %v773_v17, 7  ;;  %v865_v20 = vld [vmem:[#allocation2 + $0xa] sm:$0x1]  ;;  %v772_v21 = vld [vmem:[#allocation2 + $0x1] sm:$0x1] }
 0x12c   : > { %v864_v22 = vld [vmem:[#allocation2 + $0x2] sm:$0x1]  ;;  %v872_v23 = vrot.slane %v865_v20, 7  ;;  %v957_v24 = vld [vmem:[#allocation2 + $0xb] sm:$0x1] }
 0x12d   : > { %v691_v28 = vsel %vm690_vm2, %v689_v16, %v681_v18  ;;  %v956_v33 = vld [vmem:[#allocation2 + $0x3] sm:$0x1]  ;;  %v781_v34 = vsel %vm690_vm2, %v780_v19, %v772_v21  ;;  %v964_v39 = vrot.slane %v957_v24, 7  ;;  %v1049_v50 = vld [vmem:[#allocation2 + $0xc] sm:$0x1] }
 0x12e   : > { %v683_v25 = vld [vmem:[#allocation2 + $0x10] sm:$0x1]  ;;  %v684_v26 = vld [vmem:[#allocation2 + $0x18] sm:$0x1]  ;;  %v774_v27 = vld [vmem:[#allocation2 + $0x11] sm:$0x1]  ;;  %v873_v38 = vsel %vm690_vm2, %v872_v23, %v864_v22 }
 0x12f   : > { %v692_v29 = vrot.slane %v683_v25, 6  ;;  %v695_v30 = vrot.slane %v684_v26, 5  ;;  %v775_v31 = vld [vmem:[#allocation2 + $0x19] sm:$0x1]  ;;  %v782_v32 = vrot.slane %v774_v27, 6  ;;  %v965_v48 = vsel %vm690_vm2, %v964_v39, %v956_v33 }
 0x130   : > { %v784_v35 = vrot.slane %v775_v31, 5  ;;  %v866_v36 = vld [vmem:[#allocation2 + $0x12] sm:$0x1]  ;;  %v867_v37 = vld [vmem:[#allocation2 + $0x1a] sm:$0x1]  ;;  %v1056_v55 = vrot.slane %v1049_v50, 7 }
 0x131   : > { %v694_v40 = vsel %vm693_vm3, %v692_v29, %v691_v28  ;;  %v783_v41 = vsel %vm693_vm3, %v782_v32, %v781_v34  ;;  %v874_v42 = vrot.slane %v866_v36, 6  ;;  %v876_v43 = vrot.slane %v867_v37, 5  ;;  %v958_v44 = vld [vmem:[#allocation2 + $0x13] sm:$0x1]  ;;  %v959_v45 = vld [vmem:[#allocation2 + $0x1b] sm:$0x1] }
 0x132   : > { %v697_v46 = vsel %vm696_vm4, %v695_v30, %v694_v40  ;;  %v785_v47 = vsel %vm696_vm4, %v784_v35, %v783_v41  ;;  %v966_v49 = vrot.slane %v958_v44, 6  ;;  %v1050_v51 = vld [vmem:[#allocation2 + $0x14] sm:$0x1]  ;;  %v968_v53 = vrot.slane %v959_v45, 5  ;;  %v1051_v54 = vld [vmem:[#allocation2 + $0x1c] sm:$0x1] }
 0x133   : > { %1821 = vmatmul.mubr.msk.f32.vlgmr.msra.gmra.mrb[4].mxu0 %vm393_vm1, %v697_v46  ;;  %1826 = vmatmul.mubr.msk.f32.vlgmr.msra.gmra.mrb[4].mxu1 %vm393_vm1, %v785_v47  ;;  %v875_v52 = vsel %vm693_vm3, %v874_v42, %v873_v38  ;;  %v1058_v56 = vrot.slane %v1050_v51, 6  ;;  %v1048_v58 = vld [vmem:[#allocation2 + $0x4] sm:$0x1]  ;;  %v1141_v59 = vld [vmem:[#allocation2 + $0xd] sm:$0x1]  ;;  %v1060_v62 = vrot.slane %v1051_v54, 5 }
 0x134   : > { %1829 = vmatpush3.msra.mxu0 %v2385_v6  ;;  %1830 = vmatprep.mubr.msk.f32.mxu0 %vm2146_vm0, %v2145_v0  ;;  %v967_v57 = vsel %vm693_vm3, %v966_v49, %v965_v48  ;;  %v877_v60 = vsel %vm696_vm4, %v876_v43, %v875_v52  ;;  %v1057_v61 = vsel %vm690_vm2, %v1056_v55, %v1048_v58  ;;  %v1142_v63 = vld [vmem:[#allocation2 + $0x15] sm:$0x1]  ;;  %v1143_v1 = vld [vmem:[#allocation2 + $0x1d] sm:$0x1]  ;;  %v1148_v2 = vrot.slane %v1141_v59, 7 }
 0x135   : > { %1834 = vmatpush3.msra.mxu1 %v2385_v6  ;;  %1835 = vmatprep.mubr.msk.f32.mxu1 %vm2146_vm0, %v2145_v0  ;;  %v969_v3 = vsel %vm696_vm4, %v968_v53, %v967_v57  ;;  %v1059_v4 = vsel %vm693_vm3, %v1058_v56, %v1057_v61  ;;  %v1140_v5 = vld [vmem:[#allocation2 + $0x5] sm:$0x1]  ;;  %v1150_v7 = vrot.slane %v1142_v63, 6  ;;  %v1152_v8 = vrot.slane %v1143_v1, 5  ;;  %v1233_v9 = vld [vmem:[#allocation2 + $0xe] sm:$0x1] }
 0x136   : > { %1838 = vmatprep.subr.mxu0 %v2145_v0  ;;  %1843 = vmatprep.subr.mxu1 %v2145_v0  ;;  %v1149_v10 = vsel %vm690_vm2, %v1148_v2, %v1140_v5  ;;  %v1234_v11 = vld [vmem:[#allocation2 + $0x16] sm:$0x1]  ;;  %v1235_v12 = vld [vmem:[#allocation2 + $0x1e] sm:$0x1]  ;;  %v1240_v13 = vrot.slane %v1233_v9, 7  ;;  %v1061_v18 = vsel %vm696_vm4, %v1060_v62, %v1059_v4  ;;  %v2152_v45 = vmov 0  }
 0x137   : > { %1831 = vmatmul.mubr.msk.f32.vlgmr.msra.gmra.mrb[6].mxu0 %vm393_vm1, %v877_v60  ;;  %1836 = vmatmul.mubr.msk.f32.vlgmr.msra.gmra.mrb[6].mxu1 %vm393_vm1, %v969_v3  ;;  %v1151_v14 = vsel %vm693_vm3, %v1150_v7, %v1149_v10  ;;  %v1232_v15 = vld [vmem:[#allocation2 + $0x6] sm:$0x1]  ;;  %v1242_v16 = vrot.slane %v1234_v11, 6  ;;  %v1325_v17 = vld [vmem:[#allocation2 + $0xf] sm:$0x1]  ;;  %v1244_v19 = vrot.slane %v1235_v12, 5 }
 0x138   : > { %1839 = vmatpush3.msra.mxu0 %v2385_v6  ;;  %1840 = vmatprep.mubr.msk.f32.mxu0 %vm2146_vm0, %v2145_v0  ;;  %v1326_v20 = vld [vmem:[#allocation2 + $0x17] sm:$0x1]  ;;  %v1327_v21 = vld [vmem:[#allocation2 + $0x1f] sm:$0x1]  ;;  %v1332_v22 = vrot.slane %v1325_v17, 7  ;;  %v1153_v23 = vsel %vm696_vm4, %v1152_v8, %v1151_v14  ;;  %v1241_v24 = vsel %vm690_vm2, %v1240_v13, %v1232_v15 }
 0x139   : > { %1844 = vmatpush3.msra.mxu1 %v2385_v6  ;;  %1845 = vmatprep.mubr.msk.f32.mxu1 %vm2146_vm0, %v2145_v0  ;;  %v1324_v25 = vld [vmem:[#allocation2 + $0x7] sm:$0x1]  ;;  %v1334_v26 = vrot.slane %v1326_v20, 6  ;;  %v1336_v27 = vrot.slane %v1327_v21, 5  ;;  %v1243_v28 = vsel %vm693_vm3, %v1242_v16, %v1241_v24  ;;  %v2461_v43 = vld [vmem:[%s381_s26] sm:$0xf] }
 0x13a   : > { %1848 = vmatprep.subr.mxu0 %v2145_v0  ;;  %1853 = vmatprep.subr.mxu1 %v2145_v0  ;;  %v1333_v29 = vsel %vm690_vm2, %v1332_v22, %v1324_v25  ;;  %v1245_v31 = vsel %vm696_vm4, %v1244_v19, %v1243_v28  ;;  %v1417_v44 = vld [vmem:[%s2553_s4] sm:$0x3] }
 0x13b   : > { %1841 = vmatmul.mubr.msk.f32.vlgmr.msra.gmra.mrb[8].mxu0 %vm393_vm1, %v1061_v18  ;;  %1846 = vmatmul.mubr.msk.f32.vlgmr.msra.gmra.mrb[8].mxu1 %vm393_vm1, %v1153_v23  ;;  %v1335_v30 = vsel %vm693_vm3, %v1334_v26, %v1333_v29  ;;  %v1503_v50 = vld [vmem:[%s2556_s7] sm:$0x3] }
 0x13c   : > { %1849 = vmatpush3.msra.mxu0 %v2385_v6  ;;  %1850 = vmatprep.mubr.msk.f32.mxu0 %vm2146_vm0, %v2145_v0  ;;  %v1337_v32 = vsel %vm696_vm4, %v1336_v27, %v1335_v30  ;;  %v1418_v51 = vld [vmem:[%s2554_s5] sm:$0x3] }
 0x13d   : > { %1854 = vmatpush3.msra.mxu1 %v2385_v6  ;;  %1855 = vmatprep.mubr.msk.f32.mxu1 %vm2146_vm0, %v2145_v0 }
 0x13e   : > { %1858 = vmatprep.subr.mxu0 %v2145_v0  ;;  %1863 = vmatprep.subr.mxu1 %v2145_v0 }
 0x13f   : > { %1851 = vmatmul.mubr.msk.f32.vlgmr.msra.gmra.mrb[10].mxu0 %vm393_vm1, %v1245_v31  ;;  %1856 = vmatmul.mubr.msk.f32.vlgmr.msra.gmra.mrb[10].mxu1 %vm393_vm1, %v1337_v32 }
 0x140   : > { %1860 = vmatprep.mubr.msk.f32.mxu0 %vm2146_vm0, %v2145_v0  ;;  %1865 = vmatprep.mubr.msk.f32.mxu1 %vm2146_vm0, %v2145_v0 }
 0x141   : > { %1859 = vmatpush3.msk.msra.mxu0 %vm1428_vm6, %v2461_v43  ;;  %1983 = vset.pattern.permute.xlu0 %v2152_v45 }
 0x142   : > { %1982 = vset.pattern.permute.xlu1 %v2152_v45 }
 0x143   : > { %1861 = vmatmul.mubr.msk.f32.vlgmr.msra.gmra.mrb[12].mxu0 %vm1424_vm7, %v1417_v44 }
 0x206   : > { %v766_v6 = vpop.f32.mrb[4].mxu0  ;;  %v854_v33 = vpop.f32.mrb[4].mxu1 }
 0x207   : > { %771 = vst.msk [vmem:[#allocation3] sm:$0xf] %vm770_vm5, %v766_v6  ;;  %859 = vrot.lane.b32.xlu0 %v854_v33, %s2147_s21  ;;  %v1822_v34 = vpop.f32.mrb[5].mxu0  ;;  %v1827_v35 = vpop.f32.mrb[5].mxu1  ;;  %s2151_s21 = smov 64  }
 0x20a   : > { %v946_v36 = vpop.f32.mrb[6].mxu0  ;;  %v1038_v37 = vpop.f32.mrb[6].mxu1 }
 0x20b   : > { %1043 = vrot.lane.b32.xlu1 %v1038_v37, %s2148_s16  ;;  %v1837_v38 = vpop.f32.mrb[7].mxu1  ;;  %951 = vrot.lane.b32.xlu0 %v946_v36, %s2149_s22  ;;  %v1832_v39 = vpop.f32.mrb[7].mxu0  ;;  %s1765_s22 = sshll.u32 %s2128_s12, 1 }
 0x20e   : > { %v1130_v0 = vpop.f32.mrb[8].mxu0  ;;  %v1222_v40 = vpop.f32.mrb[8].mxu1 }
 0x20f   : > { %v1847_v41 = vpop.f32.mrb[9].mxu1  ;;  %1227 = vrot.lane.b32.xlu0 %v1222_v40, %s2150_s19  ;;  %1135 = vrot.lane.b32.xlu1 %v1130_v0, %s2151_s21  ;;  %v1842_v42 = vpop.f32.mrb[9].mxu0  ;;  %s2576_s19 = sld [smem:[#allocation14_spill]]  ;;  %s371_s21 = sand.u32 1, %s2104_s28  }
 0x210   : > { %s1743_s16 = sshll.u32 %s371_s21, 2 }
 0x211   : > { %s373_s25 = scalar_lea.vmem [#allocation7], %s1743_s16 }
 0x212   : > { %v1314_v46 = vpop.f32.mrb[10].mxu0  ;;  %v1406_v47 = vpop.f32.mrb[10].mxu1  ;;  %s1621_s14 = sshll.u32 %s373_s25, 4  ;;  %s2489_s14 = int_to_ptr.vmem [resolvable:$true] %s1621_s14 }
 0x213   : > { %v1857_v48 = vpop.f32.mrb[11].mxu1  ;;  %1411 = vrot.lane.b32.xlu0 %v1406_v47, %s2153_s6  ;;  %1319 = vrot.lane.b32.xlu1 %v1314_v46, %s2154_s20  ;;  %v1852_v49 = vpop.f32.mrb[11].mxu0  ;;  %s1617_s6 = sadd.s32 %s2124_s11, %s1765_s22  ;;  %s1606_s11 = scalar_lea.sflag [#allocation6], %s371_s21 }
 0x214   : > { %s1766_s20 = sshll.u32 %s1617_s6, 6  ;;  %s2018_s12 = scalar_lea.vmem %s2489_s14, 64 }
 0x215   : > { %v1502_v59 = vld [vmem:[%s2576_s19] sm:$0x3]  ;;  %s2487_s26 = scalar_lea.hbm %s2577_s17, %s1766_s20  ;;  %p2019_p2 = scmp.ne.s32.totalorder %s2489_s14, %s2018_s12 }
 0x216   : > { %v1498_v61 = vpop.f32.mrb[12].mxu0  ;;  %s2155_s19 = smov [#allocation7]  }
 0x217   : > { %1506 = vperm.xlu0 %1983, %v1503_v50   ;;  %1421 = vperm.xlu1 %1982, %v1418_v51   ;;  %v1862_v62 = vpop.f32.mrb[13].mxu0  ;;  %p2020_p0 = pnand %p2019_p2, %p2578_p4  ;;  %s2022_s16 = sshll.u32 %s2155_s19, 4  ;;  %s2023_s16 = int_to_ptr.vmem [resolvable:$false] %s2022_s16 }
 0x218   : > { %s2024_s22 = scalar_lea.vmem %s2023_s16, 128  ;;  %p2025_p6 = scmp.lt.s32.totalorder %s2489_s14, %s2023_s16 }
 0x219   : > { %p2021_p1 = pneg %p2020_p0  ;;  %p2026_p9 = scmp.lt.s32.totalorder %s2024_s22, %s2018_s12 }
 0x21b   : > { %p2027_p3 = por %p2026_p9, %p2025_p6 }
 0x21d   : > { %p2028_p11 = pnand %p2027_p3, %p2021_p1 }
 0x279   : > { %v860_v52 = vpop.permute.xlu0 %859 }
 0x27a   : > { %863 = vst.msk [vmem:[#allocation3] sm:$0xf] %vm862_vm8, %v860_v52 }
 0x27d   : > { %v1044_v53 = vpop.permute.xlu1 %1043  ;;  %v952_v54 = vpop.permute.xlu0 %951 }
 0x27e   : > { %955 = vst.msk [vmem:[#allocation3] sm:$0xf] %vm954_vm9, %v952_v54 }
 0x27f   : > { %1047 = vst.msk [vmem:[#allocation3] sm:$0xf] %vm1046_vm10, %v1044_v53 }
 0x281   : > { %v1228_v55 = vpop.permute.xlu0 %1227  ;;  %v1136_v56 = vpop.permute.xlu1 %1135 }
 0x282   : > { %1139 = vst.msk [vmem:[#allocation3] sm:$0xf] %vm1138_vm11, %v1136_v56 }
 0x283   : > { %1231 = vst.msk [vmem:[#allocation3] sm:$0xf] %vm1230_vm12, %v1228_v55 }
 0x285   : > { %v1412_v57 = vpop.permute.xlu0 %1411  ;;  %v1320_v58 = vpop.permute.xlu1 %1319 }
 0x286   : > { %1323 = vst.msk [vmem:[#allocation3] sm:$0xf] %vm1322_vm13, %v1320_v58 }
 0x287   : > { %1415 = vst.msk [vmem:[#allocation3] sm:$0xf] %vm1414_vm14, %v1412_v57 }
 0x28e   : > { %v1416_v60 = vld [vmem:[#allocation3] sm:$0xf] }
 0x28f   : > { %1864 = vmatpush3.msk.msra.mxu1 %vm1428_vm6, %v1416_v60 }
 0x290   : > { %1866 = vmatmul.mubr.msk.f32.vlgmr.msra.gmra.mrb[12].mxu1 %vm1424_vm7, %v1502_v59 }
 0x296   : > { %v1422_v63 = vpop.permute.xlu1 %1421  ;;  %v1507_v1 = vpop.permute.xlu0 %1506 }
 0x297   : > { %v1499_v2 = vadd.f32 %v1498_v61, %v1422_v63 }
 0x363   : > { %v1581_v3 = vpop.f32.mrb[12].mxu1 }
 0x364   : > { %v1582_v4 = vadd.f32 %v1581_v3, %v1507_v1  ;;  %v1867_v5 = vpop.f32.mrb[13].mxu1 }
 0x366   : > { %v1585_v7 = vmul.f32 %v1582_v4, %v1499_v2 }
 0x368   : > { %v1587_v8 = vsel %vm1586_vm15, %v1585_v7, 0.0 }
 0x369   : > { %v1588_v9 = vrot.slane %v1587_v8, 4 }
 0x36b   : > { %v1589_v10 = vadd.f32 %v1588_v9, %v1587_v8 }
 0x36d   : > { %v1590_v11 = vrot.slane %v1589_v10, 2 }
 0x36f   : > { %v1591_v12 = vadd.f32 %v1590_v11, %v1589_v10 }
 0x371   : > { %v1592_v13 = vrot.slane %v1591_v12, 1 }
 0x373   : > { %v1593_v14 = vadd.f32 %v1592_v13, %v1591_v12 }
 0x375   : > { %v1763_v15 = vmul.f32 -1.442695, %v1593_v14 }
 0x377   : > { %1984 = vpow2.f32 %v1763_v15 }
 0x381   : > { %v1985_v16 = vpop.eup %1984 }
 0x382   : > { %v1597_v17 = vadd.f32 1.0, %v1985_v16 }
 0x384   : > { %1986 = vrcp.f32 %v1597_v17 }
 0x38e   : > { %v1987_v18 = vpop.eup %1986 }
 0x38f   : > { %v1600_v19 = vsub.f32 1.0, %v1987_v18  ;;  %v1602_v21 = vmul.f32 %v1987_v18, %v1416_v60 }
 0x391   : > { %v1601_v20 = vmul.f32 %v1600_v19, %v2461_v43 }
 0x393   : > { %v1603_v22 = vadd.f32 %v1602_v21, %v1601_v20 }
 0x395   : > { %1604 = vst [vmem:[%s373_s25] sm:$0xf] %v1603_v22 }
 0x396   : > { %2031 = shalt.err (!%p2028_p11)
}
 0x397   : > { %s2032_s21 = scalar_lea.hbm %s2487_s26, 64  ;;  %s2036_s25 = scalar_lea.hbm %s2577_s17, 256 }
 0x398   : > { %p2033_p13 = scmp.ne.s32.totalorder %s2487_s26, %s2032_s21  ;;  %p2037_p10 = scmp.lt.u32.totalorder %s2487_s26, %s2577_s17 }
 0x399   : > { %p2038_p12 = scmp.lt.u32.totalorder %s2036_s25, %s2032_s21  ;;  %p2040_p2 = scmp.lt.u32.totalorder %s2032_s21, %s2487_s26 }
 0x39a   : > { %p2034_p5 = pnand %p2033_p13, %p2578_p4 }
 0x39b   : > { %p2039_p7 = por %p2038_p12, %p2037_p10 }
 0x39c   : > { %p2035_p8 = pneg %p2034_p5 }
 0x39d   : > { %p2041_p0 = por %p2040_p2, %p2039_p7 }
 0x39f   : > { %p2042_p1 = pnand %p2041_p0, %p2035_p8 }
 0x3a1   : > { %2045 = shalt.err (!%p2042_p1)
}
 0x3a2   : > { %1870 = dma.vmem_to_hbm [thread:$0]  (%p2578_p4), %s2489_s14, 64, %s2487_s26, %s1606_s11  }
 0x3a3 PF: > { %p1881_p6 = scmp.ge.s32.totalorder %s2140_s15, 2  ;;  %s1633_s12 = sand.u32 1, %s2100_s27  }
 0x3a4   : > { %p2579_p9 = scmp.ne.s32.totalorder %s2573_s8, 0  ;;  %s1634_s19 = scalar_lea.sflag [#allocation6], %s1633_s12 }
 0x3a6   : > { %p1877_p3 = pnand %p1881_p6, %p2579_p9 }
 0x3a8   : > { %2095 = dma.done.wait (!%p1877_p3), %s1634_s19, 64  }
 0x3a9   : > { %2097 = vsyncadd (!%p1877_p3), %s1634_s19, 4294967232  ;;  %s24_s15 = sadd.s32 1, %s2140_s15   ;;  %s2580_s11 = sld [smem:[#allocation10_spill]] }
 0x3aa   : > { %p21_p11 = scmp.ge.s32.totalorder %s24_s15, 6   ;;  %s2581_s12 = sld [smem:[#allocation11_spill]] }
 0x3ab   : > { %s2582_s14 = sld [smem:[#allocation12_spill]]  ;;  %s2583_s26 = sld [smem:[#allocation13_spill]] }
 0x3ac   : > { %s2584_s27 = smov %s2104_s28  ;;  %s2585_s28 = smov %s2108_s29 }
 0x3ad   : > { %s2586_s29 = smov %s2291_s13  ;;  %s2587_s30 = smov %s2116_s9 }
 0x3ae   : > { %s2588_s9 = smov %s2120_s10  ;;  %s2589_s10 = smov %s2288_s18 }
 0x3af   :  { %23 = sbr.rel (!%p21_p11) target bundleno = 12 (0xc), region = 103 }
 0x3b1   : > { %s2590_s13 = smov %s2582_s14  ;;  %s2591_s14 = smov %s2583_s26 }
 0x3b6   :  { %1639 = vsyncpa [#allocation5], 1 }
 0x3b7   :  { %1641 = vsyncpa [#allocation5 + $0x1], 1 }
 0x3b8   :  { %1642 = vsyncpa [#allocation6], 1 }
 0x3b9   :  { %1644 = vsyncpa [#allocation6 + $0x1], 1 }

</bundles_post_ra>
